<compile_context>
chip_gen: v7x
topology: tpu7x:2x2x1
jax: 0.10.0
libtpu: 0.0.40
codegen_flags: <defaults>
</compile_context>

<pallas_src>
import jax
import jax.numpy as jnp
from jax.experimental import pallas as pl
from jax.experimental.pallas import tpu as pltpu


# ----------------------------------------------------------------------------
# Kernel: 3 packed dense layers (layer 1 split into obs/action dots).
# ----------------------------------------------------------------------------
def _critic_kernel(obs_ref, act_ref, w1o_ref, w1a_ref, w2_ref, w3_ref, b_ref,
                   out_ref):
    b = b_ref[...]                                   # [3, 128] f32 bias slab
    mm_dt = w2_ref.dtype                             # matmul operand dtype

    # layer 1+4 (packed, obs/action split): relu(obs@W1o + actT@W1a + b1p)
    h = (jnp.dot(obs_ref[...], w1o_ref[...], preferred_element_type=jnp.float32)
         + jnp.dot(act_ref[...], w1a_ref[...], preferred_element_type=jnp.float32))
    h = jnp.maximum(h + b[0:1, :], 0.0)
    # layer 2+5 (block-diag): relu(h @ W2p + b2p)
    h = jnp.dot(h.astype(mm_dt), w2_ref[...], preferred_element_type=jnp.float32)
    h = jnp.maximum(h + b[1:2, :], 0.0)
    # layer 3+6 (block-diag, lane-dense padded): q-slab = h @ W3p + b3p
    q = jnp.dot(h.astype(mm_dt), w3_ref[...], preferred_element_type=jnp.float32)
    out_ref[...] = q + b[2:3, :]                     # full 128-lane store


# ----------------------------------------------------------------------------
# Param packing & wrapper
# ----------------------------------------------------------------------------
def _auto_matmul_dtype():
    """bf16 matmul operands on any TPU (v5e/v6e/v7x MXUs are bf16-native)."""
    try:
        if jax.devices()[0].platform == "tpu":
            return jnp.bfloat16
    except Exception:
        pass
    return jnp.float32


def pack_params(raw_params, obs_dim, act_dim, hidden=64, matmul_dtype=None):
    """Pack the 12 PyTorch-style tensors into 4 weight slabs + 1 bias slab.

    Raw weights are [in, out]; biases are [1, out].  The /10 action scaling of
    the PyTorch forward is folded into the action rows of the packed layer-1
    weight.  Assumes hidden=64 (so 2H=128 lanes) and act_dim <= hidden.
    """
    if matmul_dtype is None:
        matmul_dtype = _auto_matmul_dtype()
    (w1, b1, w2, b2, w3, b3, w4, b4, w5, b5, w6, b6) = raw_params
    H, A = hidden, act_dim
    assert (2 * H) % 128 == 0 and A <= H, "packing assumes 2H lane-aligned, A<=H"

    # layer 1: [d_in, 2H]; action rows pre-scaled by 0.1, split obs/action.
    w1p = jnp.concatenate([w1, w4], axis=1)
    w1o = w1p[:obs_dim, :]
    w1a = w1p[obs_dim:, :] * 0.1
    # layer 2: block-diag [2H, 2H]
    zh = jnp.zeros((H, H), jnp.float32)
    w2p = jnp.concatenate([jnp.concatenate([w2, zh], axis=1),
                           jnp.concatenate([zh, w5], axis=1)], axis=0)
    # layer 3: block-diag zero-padded to lane-dense [2H, 2H]
    w3p = jnp.zeros((2 * H, 2 * H), jnp.float32)
    w3p = w3p.at[:H, :A].set(w3)
    w3p = w3p.at[H:, A:2 * A].set(w6)
    # bias slab [3, 2H]; layer-3 bias occupies the first 2A lanes of row 2
    b3row = jnp.zeros((1, 2 * H), jnp.float32)
    b3row = b3row.at[:, :A].set(b3)
    b3row = b3row.at[:, A:2 * A].set(b6)
    bias = jnp.concatenate([jnp.concatenate([b1, b4], axis=1),
                            jnp.concatenate([b2, b5], axis=1),
                            b3row], axis=0)

    return (w1o.astype(matmul_dtype), w1a.astype(matmul_dtype),
            w2p.astype(matmul_dtype), w3p.astype(matmul_dtype),
            bias.astype(jnp.float32))


def critic_forward(obs, action, packed, *, block_b=512):
    """obs: [B, obs_dim] f32; action: [act_dim, B] f32 (PyTorch convention)."""
    w1o, w1a, w2p, w3p, bias = packed
    B, obs_dim = obs.shape
    act_dim = action.shape[0]
    n_lanes = w3p.shape[1]                       # 2*hidden = 128
    mm_dt = w1o.dtype

    # Activations in matmul dtype; /10 scaling is folded into w1a.
    x_obs = obs.astype(mm_dt)                    # [B, obs_dim]
    x_act = jnp.transpose(action).astype(mm_dt)  # [B, act_dim]

    weight_args = (w1o, w1a, w2p, w3p, bias)

    if B <= block_b:
        # Tiny/small batch: single invocation, everything resident in VMEM.
        vmem = pl.BlockSpec(memory_space=pltpu.MemorySpace.VMEM)
        qq = pl.pallas_call(
            _critic_kernel,
            out_shape=jax.ShapeDtypeStruct((B, n_lanes), jnp.float32),
            in_specs=[vmem] * 7,
            out_specs=vmem,
        )(x_obs, x_act, *weight_args)
    else:
        # 1-D parallel grid over batch.  Pick the block so there are >= 4 grid
        # steps (>= 2 per TensorCore on v7x) while staying <= block_b.
        bb = min(block_b, max(128, (B // 4) // 128 * 128))
        n_blk = pl.cdiv(B, bb)
        b_pad = n_blk * bb
        if b_pad != B:
            x_obs = jnp.pad(x_obs, ((0, b_pad - B), (0, 0)))
            x_act = jnp.pad(x_act, ((0, b_pad - B), (0, 0)))
        qq = pl.pallas_call(
            _critic_kernel,
            out_shape=jax.ShapeDtypeStruct((b_pad, n_lanes), jnp.float32),
            grid=(n_blk,),
            in_specs=[
                pl.BlockSpec((bb, obs_dim), lambda i: (i, 0)),
                pl.BlockSpec((bb, act_dim), lambda i: (i, 0)),
                pl.BlockSpec(w1o.shape, lambda i: (0, 0)),
                pl.BlockSpec(w1a.shape, lambda i: (0, 0)),
                pl.BlockSpec(w2p.shape, lambda i: (0, 0)),
                pl.BlockSpec(w3p.shape, lambda i: (0, 0)),
                pl.BlockSpec(bias.shape, lambda i: (0, 0)),
            ],
            out_specs=pl.BlockSpec((bb, n_lanes), lambda i: (i, 0)),
            compiler_params=pltpu.CompilerParams(
                dimension_semantics=("parallel",)),
        )(x_obs, x_act, *weight_args)
        qq = qq[:B]

    return qq[:, :act_dim], qq[:, act_dim:2 * act_dim]


# ----------------------------------------------------------------------------
# Parameter init (PyTorch nn.Linear style) and pure-JAX reference
# ----------------------------------------------------------------------------
def init_params(key, obs_dim, act_dim, hidden=64):
    """Deterministic PyTorch-Linear-style init; weights stored as [in, out]."""
    d_in = obs_dim + act_dim
    dims = [(d_in, hidden), (hidden, hidden), (hidden, act_dim),
            (d_in, hidden), (hidden, hidden), (hidden, act_dim)]
    params = []
    for (fan_in, fan_out) in dims:
        key, kw, kb = jax.random.split(key, 3)
        bound = 1.0 / jnp.sqrt(fan_in)
        w = jax.random.uniform(kw, (fan_in, fan_out), jnp.float32, -bound, bound)
        b = jax.random.uniform(kb, (1, fan_out), jnp.float32, -bound, bound)
        params.extend([w, b])
    return tuple(params)


def critic_reference(obs, action, raw_params):
    """Pure-JAX reference mirroring the PyTorch forward."""
    (w1, b1, w2, b2, w3, b3, w4, b4, w5, b5, w6, b6) = raw_params
    x = jnp.concatenate([obs, jnp.transpose(action) / 10.0], axis=-1)
    x1 = jax.nn.relu(x @ w1 + b1)
    x1 = jax.nn.relu(x1 @ w2 + b2)
    q1 = x1 @ w3 + b3
    x2 = jax.nn.relu(x @ w4 + b4)
    x2 = jax.nn.relu(x2 @ w5 + b5)
    q2 = x2 @ w6 + b6
    return q1, q2


if __name__ == "__main__":
    # obs_shape = (8,), act_shape has length 4  ->  obs_dim=8, act_dim=4
    B, OBS_DIM, ACT_DIM = 2, 8, 4

    key = jax.random.PRNGKey(0)
    k_obs, k_act, k_par, k_obs2, k_act2, k_obs3, k_act3 = jax.random.split(key, 7)

    obs = jax.random.normal(k_obs, (B, OBS_DIM), dtype=jnp.float32)
    action = jax.random.normal(k_act, (ACT_DIM, B), dtype=jnp.float32)  # [act_dim, B]
    raw = init_params(k_par, OBS_DIM, ACT_DIM)
    r1, r2 = critic_reference(obs, action, raw)

    # 1) strict f32 correctness (no grid, B=2)
    packed_f32 = pack_params(raw, OBS_DIM, ACT_DIM, matmul_dtype=jnp.float32)
    q1, q2 = critic_forward(obs, action, packed_f32)
    q1 = jax.block_until_ready(q1)
    q2 = jax.block_until_ready(q2)
    assert q1.shape == (B, ACT_DIM) and q2.shape == (B, ACT_DIM)
    assert jnp.allclose(q1, r1, rtol=1e-3, atol=1e-4)
    assert jnp.allclose(q2, r2, rtol=1e-3, atol=1e-4)

    # 2) generation-tuned matmul dtype (bf16 operands on every TPU, f32 accum)
    packed_auto = pack_params(raw, OBS_DIM, ACT_DIM)
    a1, a2 = critic_forward(obs, action, packed_auto)
    a1 = jax.block_until_ready(a1)
    a2 = jax.block_until_ready(a2)
    assert jnp.allclose(a1, r1, rtol=2e-2, atol=2e-2)
    assert jnp.allclose(a2, r2, rtol=2e-2, atol=2e-2)

    # 3) larger batch exercises the 1-D "parallel" grid path (exact multiple)
    B2 = 1024
    obs2 = jax.random.normal(k_obs2, (B2, OBS_DIM), dtype=jnp.float32)
    action2 = jax.random.normal(k_act2, (ACT_DIM, B2), dtype=jnp.float32)
    g1, g2 = critic_forward(obs2, action2, packed_f32)
    g1 = jax.block_until_ready(g1)
    g2 = jax.block_until_ready(g2)
    gr1, gr2 = critic_reference(obs2, action2, raw)
    assert jnp.allclose(g1, gr1, rtol=1e-3, atol=1e-4)
    assert jnp.allclose(g2, gr2, rtol=1e-3, atol=1e-4)

    # 4) non-multiple batch exercises the cdiv grid + zero-padded tail
    B3 = 700
    obs3 = jax.random.normal(k_obs3, (B3, OBS_DIM), dtype=jnp.float32)
    action3 = jax.random.normal(k_act3, (ACT_DIM, B3), dtype=jnp.float32)
    t1, t2 = critic_forward(obs3, action3, packed_f32)
    t1 = jax.block_until_ready(t1)
    t2 = jax.block_until_ready(t2)
    tr1, tr2 = critic_reference(obs3, action3, raw)
    assert t1.shape == (B3, ACT_DIM) and t2.shape == (B3, ACT_DIM)
    assert jnp.allclose(t1, tr1, rtol=1e-3, atol=1e-4)
    assert jnp.allclose(t2, tr2, rtol=1e-3, atol=1e-4)

    print("KERNEL_OK")
</pallas_src>

<mosaic_0001>
module attributes {stable_mosaic.version = 11 : i64} {
  func.func @_critic_kernel(%arg0: memref<2x8xf32, #tpu.memory_space<vmem>>, %arg1: memref<2x4xf32, #tpu.memory_space<vmem>>, %arg2: memref<8x128xf32, #tpu.memory_space<vmem>>, %arg3: memref<4x128xf32, #tpu.memory_space<vmem>>, %arg4: memref<128x128xf32, #tpu.memory_space<vmem>>, %arg5: memref<128x128xf32, #tpu.memory_space<vmem>>, %arg6: memref<3x128xf32, #tpu.memory_space<vmem>>, %arg7: memref<2x128xf32, #tpu.memory_space<vmem>>) attributes {dimension_semantics = [], scalar_prefetch = 0 : i64, scratch_operands = 0 : i64, tpu.core_type = #tpu.core_type<tc>} {
    %c0 = arith.constant 0 : index
    %c0_0 = arith.constant 0 : index
    %0 = vector.load %arg6[%c0, %c0_0] : memref<3x128xf32, #tpu.memory_space<vmem>>, vector<3x128xf32>
    %c0_1 = arith.constant 0 : index
    %c0_2 = arith.constant 0 : index
    %1 = vector.load %arg0[%c0_1, %c0_2] : memref<2x8xf32, #tpu.memory_space<vmem>>, vector<2x8xf32>
    %c0_3 = arith.constant 0 : index
    %c0_4 = arith.constant 0 : index
    %2 = vector.load %arg2[%c0_3, %c0_4] : memref<8x128xf32, #tpu.memory_space<vmem>>, vector<8x128xf32>
    %cst = arith.constant dense<0.000000e+00> : vector<2x128xf32>
    %3 = tpu.matmul %1, %2, %cst {dimension_numbers = #tpu.dot_dimension_numbers<[1], [0], [0], [1], [0, 0, 1, 1], [], []>} : vector<2x8xf32>, vector<8x128xf32>, vector<2x128xf32> -> vector<2x128xf32>
    %c0_5 = arith.constant 0 : index
    %c0_6 = arith.constant 0 : index
    %4 = vector.load %arg1[%c0_5, %c0_6] : memref<2x4xf32, #tpu.memory_space<vmem>>, vector<2x4xf32>
    %c0_7 = arith.constant 0 : index
    %c0_8 = arith.constant 0 : index
    %5 = vector.load %arg3[%c0_7, %c0_8] : memref<4x128xf32, #tpu.memory_space<vmem>>, vector<4x128xf32>
    %cst_9 = arith.constant dense<0.000000e+00> : vector<2x128xf32>
    %6 = tpu.matmul %4, %5, %cst_9 {dimension_numbers = #tpu.dot_dimension_numbers<[1], [0], [0], [1], [0, 0, 1, 1], [], []>} : vector<2x4xf32>, vector<4x128xf32>, vector<2x128xf32> -> vector<2x128xf32>
    %7 = arith.addf %3, %6 : vector<2x128xf32>
    %8 = vector.extract_strided_slice %0 {offsets = [0, 0], sizes = [1, 128], strides = [1, 1]} : vector<3x128xf32> to vector<1x128xf32>
    %9 = vector.broadcast %8 : vector<1x128xf32> to vector<2x128xf32>
    %10 = arith.addf %7, %9 : vector<2x128xf32>
    %cst_10 = arith.constant 0.000000e+00 : f32
    %11 = vector.broadcast %cst_10 : f32 to vector<2x128xf32>
    %12 = arith.maximumf %10, %11 : vector<2x128xf32>
    %c0_11 = arith.constant 0 : index
    %c0_12 = arith.constant 0 : index
    %13 = vector.load %arg4[%c0_11, %c0_12] : memref<128x128xf32, #tpu.memory_space<vmem>>, vector<128x128xf32>
    %cst_13 = arith.constant dense<0.000000e+00> : vector<2x128xf32>
    %14 = tpu.matmul %12, %13, %cst_13 {dimension_numbers = #tpu.dot_dimension_numbers<[1], [0], [0], [1], [0, 0, 1, 1], [], []>} : vector<2x128xf32>, vector<128x128xf32>, vector<2x128xf32> -> vector<2x128xf32>
    %15 = vector.extract_strided_slice %0 {offsets = [1, 0], sizes = [1, 128], strides = [1, 1]} : vector<3x128xf32> to vector<1x128xf32>
    %16 = vector.broadcast %15 : vector<1x128xf32> to vector<2x128xf32>
    %17 = arith.addf %14, %16 : vector<2x128xf32>
    %cst_14 = arith.constant 0.000000e+00 : f32
    %18 = vector.broadcast %cst_14 : f32 to vector<2x128xf32>
    %19 = arith.maximumf %17, %18 : vector<2x128xf32>
    %c0_15 = arith.constant 0 : index
    %c0_16 = arith.constant 0 : index
    %20 = vector.load %arg5[%c0_15, %c0_16] : memref<128x128xf32, #tpu.memory_space<vmem>>, vector<128x128xf32>
    %cst_17 = arith.constant dense<0.000000e+00> : vector<2x128xf32>
    %21 = tpu.matmul %19, %20, %cst_17 {dimension_numbers = #tpu.dot_dimension_numbers<[1], [0], [0], [1], [0, 0, 1, 1], [], []>} : vector<2x128xf32>, vector<128x128xf32>, vector<2x128xf32> -> vector<2x128xf32>
    %22 = vector.extract_strided_slice %0 {offsets = [2, 0], sizes = [1, 128], strides = [1, 1]} : vector<3x128xf32> to vector<1x128xf32>
    %23 = vector.broadcast %22 : vector<1x128xf32> to vector<2x128xf32>
    %24 = arith.addf %21, %23 : vector<2x128xf32>
    %c0_18 = arith.constant 0 : index
    %c0_19 = arith.constant 0 : index
    %25 = vector.load %arg7[%c0_18, %c0_19] : memref<2x128xf32, #tpu.memory_space<vmem>>, vector<2x128xf32>
    tpu.vector_store %arg7[%c0_18, %c0_19], %24 {strides = array<i32>} : memref<2x128xf32, #tpu.memory_space<vmem>>, vector<2x128xf32>,
    return
  }
}

</mosaic_0001>

<bundles_post_ra>
// kernel: tpu_custom_call.1
= control target key start
LH: loop header
LB: loop body
LE: loop exit
PB: predicated region body
PF: predicated region fallthrough
CT: control target
= control target key end

     0   :  { %12 = vsyncpa [#allocation3], 0  ;;  %s876_s0 = inlined_call_operand.hbm [shape: f32[2,8], index: 0, kind: input, shape index: {}]   ;;  %s877_s1 = inlined_call_operand.vmem [shape: f32[2,4], index: 1, kind: input, shape index: {}]   ;;  %s878_s2 = inlined_call_operand.hbm [shape: f32[8,128], index: 2, kind: input, shape index: {}]   ;;  %s879_s3 = inlined_call_operand.vmem [shape: f32[4,128], index: 3, kind: input, shape index: {}]   ;;  %s880_s4 = inlined_call_operand.hbm [shape: f32[128,128], index: 4, kind: input, shape index: {}]   ;;  %s881_s5 = inlined_call_operand.hbm [shape: f32[128,128], index: 5, kind: input, shape index: {}]   ;;  %s882_s6 = inlined_call_operand.vmem [shape: f32[3,128], index: 6, kind: input, shape index: {}]   ;;  %s883_s7 = inlined_call_operand.hbm [shape: f32[2,128], index: 7, kind: output, shape index: {}]  }
   0x1   :  { %13 = vsyncpa [#allocation6], 0 }
   0x2   :  { %14 = vsyncpa [#allocation9], 0 }
   0x3   :  { %15 = vsyncpa [#allocation4], 0  ;;  %s737_s24 = smov [#allocation5]   ;;  %s738_s26 = smov [#allocation2]  }
   0x4   :  { %s34_s25 = sshll.u32 %s737_s24, 4  ;;  %s22_s27 = sshll.u32 %s738_s26, 4  ;;  %s35_s25 = int_to_ptr.vmem [resolvable:$true] %s34_s25  ;;  %s23_s27 = int_to_ptr.vmem [resolvable:$true] %s22_s27 }
   0x5   :  { %s619_s30 = scalar_lea.hbm %s878_s2, 128 }
   0x6   :  { %p620_p0 = scmp.ne.s32.totalorder %s878_s2, %s619_s30  ;;  %p623_p1 = scmp.lt.u32.totalorder %s619_s30, %s878_s2 }
   0x8   :  { %p625_p2 = pnand %p623_p1, %p620_p0 }
   0xa   :  { %628 = shalt.err (!%p625_p2)
}
   0xb   :  { %s629_s12 = scalar_lea.vmem %s35_s25, 128  ;;  %p634_p4 = scmp.lt.s32.totalorder %s35_s25, %s35_s25 }
   0xc   :  { %p630_p3 = scmp.ne.s32.totalorder %s35_s25, %s629_s12  ;;  %p635_p5 = scmp.lt.s32.totalorder %s629_s12, %s629_s12 }
   0xe   :  { %p636_p6 = por %p635_p5, %p634_p4 }
  0x10   :  { %p637_p7 = pnand %p636_p6, %p630_p3 }
  0x12   :  { %640 = shalt.err (!%p637_p7)
}
  0x13   :  { %37 = dma.hbm_to_vmem [thread:$0]  %s878_s2, 128, %s35_s25, [#allocation6]  }
  0x14   :  { %s641_s17 = scalar_lea.hbm %s876_s0, 32 }
  0x15   :  { %p642_p8 = scmp.ne.s32.totalorder %s876_s0, %s641_s17  ;;  %p645_p9 = scmp.lt.u32.totalorder %s641_s17, %s876_s0 }
  0x17   :  { %p647_p10 = pnand %p645_p9, %p642_p8 }
  0x19   :  { %650 = shalt.err (!%p647_p10)
}
  0x1a   :  { %s651_s22 = scalar_lea.vmem %s23_s27, 32  ;;  %p656_p12 = scmp.lt.s32.totalorder %s23_s27, %s23_s27 }
  0x1b   :  { %p652_p11 = scmp.ne.s32.totalorder %s23_s27, %s651_s22  ;;  %p657_p13 = scmp.lt.s32.totalorder %s651_s22, %s651_s22 }
  0x1d   :  { %p658_p0 = por %p657_p13, %p656_p12 }
  0x1f   :  { %p659_p1 = pnand %p658_p0, %p652_p11 }
  0x21   :  { %662 = shalt.err (!%p659_p1)
}
  0x22   :  { %25 = dma.hbm_to_vmem [thread:$0]  %s876_s0, 32, %s23_s27, [#allocation3]  }
  0x23   :  { %s739_s24 = smov [#allocation7]   ;;  %s663_s29 = scalar_lea.hbm %s880_s4, 2048 }
  0x24   :  { %s45_s25 = sshll.u32 %s739_s24, 4  ;;  %p664_p2 = scmp.ne.s32.totalorder %s880_s4, %s663_s29  ;;  %s46_s25 = int_to_ptr.vmem [resolvable:$true] %s45_s25 }
  0x25   :  { %p667_p3 = scmp.lt.u32.totalorder %s663_s29, %s880_s4 }
  0x27   :  { %p669_p4 = pnand %p667_p3, %p664_p2 }
  0x29   :  { %672 = shalt.err (!%p669_p4)
}
  0x2a   :  { %s673_s11 = scalar_lea.vmem %s46_s25, 2048  ;;  %p678_p6 = scmp.lt.s32.totalorder %s46_s25, %s46_s25 }
  0x2b   :  { %p674_p5 = scmp.ne.s32.totalorder %s46_s25, %s673_s11  ;;  %p679_p7 = scmp.lt.s32.totalorder %s673_s11, %s673_s11 }
  0x2d   :  { %p680_p8 = por %p679_p7, %p678_p6 }
  0x2f   :  { %p681_p9 = pnand %p680_p8, %p674_p5 }
  0x31   :  { %684 = shalt.err (!%p681_p9)
}
  0x32   :  { %s740_s0 = smov 128   ;;  %s741_s27 = smov 8  }
  0x33   :  { %51 = dma.hbm_to_vmem [thread:$0]  %s880_s4, 2048, %s46_s25, [#allocation6], %s740_s0, %s740_s0, %s741_s27  }
  0x34   :  { %s742_s14 = smov [#allocation8]   ;;  %s685_s18 = scalar_lea.hbm %s881_s5, 2048 }
  0x35   :  { %s57_s15 = sshll.u32 %s742_s14, 4  ;;  %p686_p10 = scmp.ne.s32.totalorder %s881_s5, %s685_s18  ;;  %s58_s15 = int_to_ptr.vmem [resolvable:$true] %s57_s15 }
  0x36   :  { %p689_p11 = scmp.lt.u32.totalorder %s685_s18, %s881_s5 }
  0x38   :  { %p691_p12 = pnand %p689_p11, %p686_p10 }
  0x3a   :  { %694 = shalt.err (!%p691_p12)
}
  0x3b   :  { %s695_s2 = scalar_lea.vmem %s58_s15, 2048  ;;  %p700_p0 = scmp.lt.s32.totalorder %s58_s15, %s58_s15 }
  0x3c   :  { %p696_p13 = scmp.ne.s32.totalorder %s58_s15, %s695_s2  ;;  %p701_p1 = scmp.lt.s32.totalorder %s695_s2, %s695_s2 }
  0x3e   :  { %p702_p2 = por %p701_p1, %p700_p0 }
  0x40   :  { %p703_p3 = pnand %p702_p2, %p696_p13 }
  0x42   :  { %706 = shalt.err (!%p703_p3)
}
  0x43   :  { %63 = dma.hbm_to_vmem [thread:$0]  %s881_s5, 2048, %s58_s15, [#allocation9], %s740_s0, %s740_s0, %s741_s27  }
  0x44   :  { %729 = dma.done.wait [#allocation3], 32  }
  0x45   :  { %730 = vsyncadd [#allocation3], 4294967264 }
  0x46   :  { %731 = dma.done.wait [#allocation6], 2176  }
  0x47   :  { %732 = vsyncadd [#allocation6], 4294965120 }
  0x48   :  { %733 = dma.done.wait [#allocation9], 2048  }
  0x49   :  { %734 = vsyncadd [#allocation9], 4294965248  ;;  %v743_v0 = vmov 0.0   ;;  %vm744_vm0 = vmmov 0   ;;  %vm87_vm1 = vcmask 1043456   ;;  %vm83_vm2 = vcmask 31744  }
  0x4a   :  { %481 = vmatprep.subr.mxu0 %v743_v0  ;;  %486 = vmatprep.subr.mxu1 %v743_v0  ;;  %vm161_vm3 = vcmask 64512   ;;  %v82_v1 = vld [vmem:[%s879_s3] sm:$0xf]  ;;  %v80_v2 = vld [vmem:[#allocation5] sm:$0xff]  ;;  %v79_v4 = vld [vmem:[#allocation2] sm:$0x3]  ;;  %v235_v51 = vlaneseq }
  0x4b   :  { %483 = vmatprep.mubr.msk.f32.mxu0 %vm744_vm0, %v743_v0  ;;  %488 = vmatprep.mubr.msk.f32.mxu1 %vm744_vm0, %v743_v0  ;;  %v81_v3 = vld [vmem:[%s877_s1] sm:$0x3]  ;;  %v242_v6 = vld [vmem:[#allocation7 + $0x8] sm:$0xff]  ;;  %v243_v8 = vld [vmem:[#allocation7 + $0x10] sm:$0xff]  ;;  %v745_v10 = vmov 0.0|0.0  }
  0x4c   :  { %482 = vmatpush3.msk.msra.mxu0 %vm87_vm1, %v82_v1  ;;  %487 = vmatpush3.msra.mxu1 %v80_v2  ;;  %v241_v5 = vld [vmem:[#allocation7] sm:$0xff]  ;;  %v244_v9 = vld [vmem:[#allocation7 + $0x18] sm:$0xff]  ;;  %v246_v13 = vld [vmem:[#allocation7 + $0x28] sm:$0xff]  ;;  %v236_v52 = vshrl.u32 %v235_v51, 7 }
  0x4d   :  { %484 = vmatmul.mubr.msk.f32.vlgmr.msra.gmra.mrb[0].mxu0 %vm83_vm2, %v81_v3  ;;  %489 = vmatmul.mubr.msk.f32.vlgmr.msra.gmra.mrb[0].mxu1 %vm161_vm3, %v79_v4  ;;  %v562_v7 = vpack.c.bf16 %v242_v6, %v241_v5  ;;  %v565_v11 = vpack.c.bf16 %v244_v9, %v243_v8  ;;  %v245_v12 = vld [vmem:[#allocation7 + $0x20] sm:$0xff]  ;;  %v247_v15 = vld [vmem:[#allocation7 + $0x30] sm:$0xff]  ;;  %v248_v16 = vld [vmem:[#allocation7 + $0x38] sm:$0xff] }
  0x4e   :  { %561 = vmatprep.subr.bf16.mxu0 %v745_v10  ;;  %523 = vmatprep.mubr.msk.f32.mxu0 %vm744_vm0, %v743_v0  ;;  %v568_v14 = vpack.c.bf16 %v246_v13, %v245_v12  ;;  %v571_v17 = vpack.c.bf16 %v248_v16, %v247_v15  ;;  %v249_v18 = vld [vmem:[#allocation7 + $0x40] sm:$0xff]  ;;  %v250_v19 = vld [vmem:[#allocation7 + $0x48] sm:$0xff]  ;;  %v251_v21 = vld [vmem:[#allocation7 + $0x50] sm:$0xff]  ;;  %v237_v53 = vsub.s32 0, %v236_v52  ;;  %v259_v2 = vsub.s32 1, %v236_v52 }
  0x4f   :  { %563 = vmatpush3.bf16.msra.mxu0 %v562_v7  ;;  %585 = vmatprep.subr.bf16.mxu1 %v745_v10  ;;  %v574_v20 = vpack.c.bf16 %v250_v19, %v249_v18  ;;  %v252_v22 = vld [vmem:[#allocation7 + $0x58] sm:$0xff]  ;;  %v253_v24 = vld [vmem:[#allocation7 + $0x60] sm:$0xff]  ;;  %v254_v25 = vld [vmem:[#allocation7 + $0x68] sm:$0xff]  ;;  %v350_v8 = vsub.s32 2, %v236_v52 }
  0x50   :  { %564 = vmatprep.subr.bf16.mxu0 %v745_v10  ;;  %558 = vmatprep.mubr.msk.f32.mxu1 %vm744_vm0, %v743_v0  ;;  %v577_v23 = vpack.c.bf16 %v252_v22, %v251_v21  ;;  %v580_v26 = vpack.c.bf16 %v254_v25, %v253_v24  ;;  %v255_v27 = vld [vmem:[#allocation7 + $0x70] sm:$0xff]  ;;  %v256_v28 = vld [vmem:[#allocation7 + $0x78] sm:$0xff]  ;;  %v332_v30 = vld [vmem:[#allocation8] sm:$0xff] }
  0x51   :  { %v583_v29 = vpack.c.bf16 %v256_v28, %v255_v27  ;;  %v333_v31 = vld [vmem:[#allocation8 + $0x8] sm:$0xff]  ;;  %v334_v32 = vld [vmem:[#allocation8 + $0x10] sm:$0xff]  ;;  %v335_v34 = vld [vmem:[#allocation8 + $0x18] sm:$0xff] }
  0x52   :  { %v586_v33 = vpack.c.bf16 %v333_v31, %v332_v30  ;;  %v589_v35 = vpack.c.bf16 %v335_v34, %v334_v32  ;;  %v336_v36 = vld [vmem:[#allocation8 + $0x20] sm:$0xff]  ;;  %v337_v37 = vld [vmem:[#allocation8 + $0x28] sm:$0xff]  ;;  %v338_v39 = vld [vmem:[#allocation8 + $0x30] sm:$0xff] }
  0x53   :  { %566 = vmatpush3.bf16.msra.mxu0 %v565_v11  ;;  %v592_v38 = vpack.c.bf16 %v337_v37, %v336_v36  ;;  %v339_v40 = vld [vmem:[#allocation8 + $0x38] sm:$0xff]  ;;  %v340_v42 = vld [vmem:[#allocation8 + $0x40] sm:$0xff]  ;;  %v341_v43 = vld [vmem:[#allocation8 + $0x48] sm:$0xff] }
  0x54   :  { %567 = vmatprep.subr.bf16.mxu0 %v745_v10  ;;  %587 = vmatpush3.bf16.msra.mxu1 %v586_v33  ;;  %v595_v41 = vpack.c.bf16 %v339_v40, %v338_v39  ;;  %v598_v44 = vpack.c.bf16 %v341_v43, %v340_v42  ;;  %v342_v45 = vld [vmem:[#allocation8 + $0x50] sm:$0xff]  ;;  %v343_v46 = vld [vmem:[#allocation8 + $0x58] sm:$0xff]  ;;  %v344_v48 = vld [vmem:[#allocation8 + $0x60] sm:$0xff] }
  0x55   :  { %588 = vmatprep.subr.bf16.mxu1 %v745_v10  ;;  %v601_v47 = vpack.c.bf16 %v343_v46, %v342_v45  ;;  %v345_v49 = vld [vmem:[#allocation8 + $0x68] sm:$0xff]  ;;  %v346_v63 = vld [vmem:[#allocation8 + $0x70] sm:$0xff]  ;;  %v347_v0 = vld [vmem:[#allocation8 + $0x78] sm:$0xff] }
  0x56   :  { %v604_v50 = vpack.c.bf16 %v345_v49, %v344_v48  ;;  %v78_v54 = vld [vmem:[%s882_s6] sm:$0x7]  ;;  %v607_v1 = vpack.c.bf16 %v347_v0, %v346_v63  ;;  %s746_s6 = smov [#allocation10]  }
  0x57   :  { %569 = vmatpush3.bf16.msra.mxu0 %v568_v14  ;;  %v238_v55 = vrot.slane %v78_v54, %v237_v53  ;;  %v260_v3 = vrot.slane %v78_v54, %v259_v2  ;;  %v351_v9 = vrot.slane %v78_v54, %v350_v8  ;;  %s429_s28 = sshll.u32 %s746_s6, 4  ;;  %s430_s28 = int_to_ptr.vmem [resolvable:$true] %s429_s28 }
  0x58   :  { %570 = vmatprep.subr.bf16.mxu0 %v745_v10  ;;  %590 = vmatpush3.bf16.msra.mxu1 %v589_v35  ;;  %s707_s29 = scalar_lea.vmem %s430_s28, 32  ;;  %p712_p5 = scmp.lt.s32.totalorder %s430_s28, %s430_s28 }
  0x59   :  { %591 = vmatprep.subr.bf16.mxu1 %v745_v10  ;;  %p708_p4 = scmp.ne.s32.totalorder %s430_s28, %s707_s29  ;;  %p713_p6 = scmp.lt.s32.totalorder %s707_s29, %s707_s29 }
  0x5b   :  { %572 = vmatpush3.bf16.msra.mxu0 %v571_v17  ;;  %p714_p7 = por %p713_p6, %p712_p5 }
  0x5c   :  { %573 = vmatprep.subr.bf16.mxu0 %v745_v10  ;;  %593 = vmatpush3.bf16.msra.mxu1 %v592_v38 }
  0x5d   :  { %594 = vmatprep.subr.bf16.mxu1 %v745_v10  ;;  %p715_p8 = pnand %p714_p7, %p708_p4 }
  0x5f   :  { %575 = vmatpush3.bf16.msra.mxu0 %v574_v20 }
  0x60   :  { %576 = vmatprep.subr.bf16.mxu0 %v745_v10  ;;  %596 = vmatpush3.bf16.msra.mxu1 %v595_v41 }
  0x61   :  { %597 = vmatprep.subr.bf16.mxu1 %v745_v10 }
  0x63   :  { %578 = vmatpush3.bf16.msra.mxu0 %v577_v23 }
  0x64   :  { %579 = vmatprep.subr.bf16.mxu0 %v745_v10  ;;  %599 = vmatpush3.bf16.msra.mxu1 %v598_v44 }
  0x65   :  { %600 = vmatprep.subr.bf16.mxu1 %v745_v10 }
  0x67   :  { %581 = vmatpush3.bf16.msra.mxu0 %v580_v26 }
  0x68   :  { %582 = vmatprep.subr.bf16.mxu0 %v745_v10  ;;  %602 = vmatpush3.bf16.msra.mxu1 %v601_v47 }
  0x69   :  { %603 = vmatprep.subr.bf16.mxu1 %v745_v10 }
  0x6b   :  { %584 = vmatpush3.bf16.msra.mxu0 %v583_v29 }
  0x6c   :  { %605 = vmatpush3.bf16.msra.mxu1 %v604_v50 }
  0x6d   :  { %606 = vmatprep.subr.bf16.mxu1 %v745_v10 }
  0x70   :  { %608 = vmatpush3.bf16.msra.mxu1 %v607_v1 }
 0x120   :  { %v157_v56 = vpop.f32.mrb[0].mxu0  ;;  %v231_v57 = vpop.f32.mrb[0].mxu1 }
 0x121   :  { %v232_v58 = vadd.f32 %v231_v57, %v157_v56  ;;  %v485_v59 = vpop.f32.mrb[1].mxu0  ;;  %v490_v60 = vpop.f32.mrb[1].mxu1 }
 0x123   :  { %v239_v61 = vadd.f32 %v238_v55, %v232_v58 }
 0x125   :  { %v240_v62 = vmax.f32 %v239_v61, 0.0 }
 0x127   :  { %524 = vmatmul.mubr.f32.vlgmr.msra.gmra.mrb[2].mxu0 %v240_v62 }
 0x1fa   :  { %v327_v4 = vpop.f32.mrb[2].mxu0 }
 0x1fb   :  { %v328_v5 = vadd.f32 %v327_v4, %v260_v3  ;;  %v525_v6 = vpop.f32.mrb[3].mxu0 }
 0x1fd   :  { %v331_v7 = vmax.f32 %v328_v5, 0.0 }
 0x1ff   :  { %559 = vmatmul.mubr.f32.vlgmr.msra.gmra.mrb[2].mxu1 %v331_v7 }
 0x2d2   :  { %v418_v10 = vpop.f32.mrb[2].mxu1 }
 0x2d3   :  { %v419_v11 = vadd.f32 %v418_v10, %v351_v9  ;;  %v560_v12 = vpop.f32.mrb[3].mxu1 }
 0x2d5   :  { %422 = vst [vmem:[#allocation10] sm:$0x3] %v419_v11 }
 0x2d6   :  { %718 = shalt.err (!%p715_p8)
}
 0x2d7   :  { %s719_s9 = scalar_lea.hbm %s883_s7, 32 }
 0x2d8   :  { %p720_p9 = scmp.ne.s32.totalorder %s883_s7, %s719_s9  ;;  %p723_p10 = scmp.lt.u32.totalorder %s719_s9, %s883_s7 }
 0x2da   :  { %p725_p11 = pnand %p723_p10, %p720_p9 }
 0x2dc   :  { %728 = shalt.err (!%p725_p11)
}
 0x2dd   :  { %432 = dma.vmem_to_hbm [thread:$0]  %s430_s28, 32, %s883_s7, [#allocation4]  }
 0x2de   :  { %735 = dma.done.wait [#allocation4], 32  }
 0x2df   :  { %736 = vsyncadd [#allocation4], 4294967264 }
 0x2e0   :  { %436 = vsyncpa [#allocation3], 1 }
 0x2e1   :  { %437 = vsyncpa [#allocation6], 1 }
 0x2e2   :  { %438 = vsyncpa [#allocation9], 1 }
 0x2e3   :  { %439 = vsyncpa [#allocation4], 1 }

</bundles_post_ra>
